<compile_context>
chip_gen: v7x
topology: tpu7x:2x2x1
jax: 0.10.0
libtpu: 0.0.40
codegen_flags: <defaults>
</compile_context>

<pallas_src>
import functools
import math

import jax
import jax.numpy as jnp
from jax.experimental import pallas as pl
from jax.experimental.pallas import tpu as pltpu


def _styled_conv_kernel(nw_ref, w_ref, x_ref, noise_ref, bias_ref, out_ref,
                        *, ksize, wp, ow):
    # nw_ref   : SMEM (1,)                 NoiseInjection scalar weight (f32)
    # w_ref    : VMEM (1, k*k, tco, Cin)   per-batch, per-tap modulated+demodulated weights (bf16)
    # x_ref    : VMEM (1, Cin, HWx)        zero-padded, flattened activations (bf16)
    # noise_ref: VMEM (1, 1, OW)           noise plane in padded-width layout (f32)
    # bias_ref : VMEM (tco, 1)             FusedLeakyReLU bias (f32)
    # out_ref  : VMEM (1, tco, OW)         output in padded-width layout
    tco = out_ref.shape[1]
    acc = jnp.zeros((tco, ow), jnp.float32)
    for t in range(ksize * ksize):
        kh, kw = t // ksize, t % ksize
        off = kh * wp + kw                                     # static flat offset for this tap
        x_tap = x_ref[0, :, pl.ds(off, ow)]                    # (Cin, OW) bf16 slice
        acc = acc + jnp.dot(w_ref[0, t], x_tap,                # MXU, fp32 accumulation
                            preferred_element_type=jnp.float32)
    # Elementwise epilogue rides free VPU slots behind the matmuls.
    y = acc + nw_ref[0] * noise_ref[0] + bias_ref[...]
    y = jnp.where(y >= 0.0, y, 0.2 * y) * math.sqrt(2.0)       # FusedLeakyReLU
    out_ref[...] = y[None].astype(out_ref.dtype)


def _round_up(n, m):
    return ((n + m - 1) // m) * m


def _vmem_bytes(tco, cin, hwx, ow, kk, out_bytes):
    """Rough double-buffered VMEM footprint of one grid step (lane/sublane padded)."""
    lane = lambda n: _round_up(n, 128)
    sub = lambda n: _round_up(n, 8)
    x_b = 2 * sub(cin) * lane(hwx) * 2           # bf16 activations
    w_b = 2 * kk * sub(tco) * lane(cin) * 2      # bf16 weights
    n_b = 2 * 8 * lane(ow) * 4                   # f32 noise
    o_b = 2 * sub(tco) * lane(ow) * out_bytes    # output
    b_b = 2 * sub(tco) * 128 * 4                 # bias
    return x_b + w_b + n_b + o_b + b_b


def _pick_cout_tile(cout, fits, prefer_split):
    """Largest output-channel tile that divides Cout, is 8-aligned (or Cout itself),
    and fits the VMEM budget; raises a clear error instead of silently overflowing."""
    cands = sorted({d for d in range(8, cout + 1, 8) if cout % d == 0} | {cout})
    fitting = [t for t in cands if fits(t)]
    if not fitting:
        raise ValueError(
            "StyledConv Pallas kernel: activations do not fit the VMEM budget even at the "
            "smallest output-channel tile; this resolution needs halo'd spatial tiling "
            "(see TODO).")
    if prefer_split:
        split = [t for t in fitting if cout // t >= 2]
        if split:
            return max(split)
    return max(fitting)


def styled_conv_forward(x, style, params, noise=None, *, noise_key=None,
                        demodulate=True, eps=1e-8):
    """StyledConv forward (upsample=False).

    x:      (B, Cin, H, W) float32
    style:  (B, style_dim)
    params: dict with
        'conv_weight' : (1, Cout, Cin, k, k)  ModulatedConv2d weight
        'mod_weight'  : (Cin, style_dim)      EqualLinear weight
        'mod_bias'    : (Cin,)                EqualLinear bias (init 1)
        'noise_weight': (1,)                  NoiseInjection scalar (init 0)
        'act_bias'    : (Cout,)               FusedLeakyReLU bias (init 0)
    noise:  (B, 1, H, W) or None (then a fresh draw from `noise_key` is used)
    """
    B, Cin, H, W = x.shape
    conv_w = params['conv_weight']
    _, Cout, _, k, _ = conv_w.shape
    style_dim = params['mod_weight'].shape[1]
    p = k // 2
    kk = k * k
    Hp, Wp = H + 2 * p, W + 2 * p
    OW = H * Wp                  # padded-width flat output length per image
    HWx = Hp * Wp + 2 * p        # flat input length (+2p tail so every tap slice is in-bounds)

    # --- EqualLinear style modulation (tiny matmul, left to XLA) -------------
    lr_mul = 1.0
    mod_scale = (1.0 / math.sqrt(style_dim)) * lr_mul
    s = style @ (params['mod_weight'] * mod_scale).T + params['mod_bias'] * lr_mul   # (B, Cin)

    # --- per-batch modulated / demodulated weights (tiny, fp32, left to XLA) -
    conv_scale = 1.0 / math.sqrt(Cin * k * k)
    w = conv_scale * conv_w * s[:, None, :, None, None]                 # (B, Cout, Cin, k, k)
    if demodulate:
        demod = jax.lax.rsqrt(jnp.sum(w * w, axis=(2, 3, 4)) + eps)     # (B, Cout)
        w = w * demod[:, :, None, None, None]
    # (B, k*k, Cout, Cin), bf16 for the MXU; fp32 accumulation happens in-kernel.
    w_taps = jnp.transpose(w.reshape(B, Cout, Cin, kk), (0, 3, 1, 2)).astype(jnp.bfloat16)

    # --- zero-padded, flattened activations (no k*k im2col blow-up) ----------
    xp = jnp.pad(x, ((0, 0), (0, 0), (p, p), (p, p))).reshape(B, Cin, Hp * Wp)
    x_flat = jnp.pad(xp, ((0, 0), (0, 0), (0, 2 * p))).astype(jnp.bfloat16)   # (B, Cin, HWx)

    # --- noise ----------------------------------------------------------------
    if noise is None:
        if noise_key is None:
            raise ValueError("noise=None requires an explicit noise_key "
                             "(PyTorch draws fresh noise each forward).")
        noise = jax.random.normal(noise_key, (B, 1, H, W), dtype=jnp.float32)
    noise_flat = jnp.pad(noise.astype(jnp.float32),
                         ((0, 0), (0, 0), (0, 0), (0, 2 * p))).reshape(B, 1, OW)

    bias_col = params['act_bias'].reshape(Cout, 1).astype(jnp.float32)
    noise_w = params['noise_weight'].reshape(1).astype(jnp.float32)

    # --- generation-aware VMEM budget & output-channel tile -------------------
    out_dtype = x.dtype
    out_bytes = jnp.dtype(out_dtype).itemsize
    try:
        vmem_cap = int(getattr(pltpu.get_tpu_info(), 'vmem_capacity_bytes', 0)) or (64 * 2**20)
    except Exception:
        vmem_cap = 64 * 2**20
    vmem_budget = min(int(0.7 * vmem_cap), 96 * 2**20)

    fits = lambda tco: _vmem_bytes(tco, Cin, HWx, OW, kk, out_bytes) <= vmem_budget
    # If B == 1 prefer >= 2 cout tiles so v7x's two TensorCores both get work.
    tco = _pick_cout_tile(Cout, fits, prefer_split=(B == 1 and Cout >= 16))
    grid = (B, Cout // tco)

    kernel = functools.partial(_styled_conv_kernel, ksize=k, wp=Wp, ow=OW)

    cost = pl.CostEstimate(
        flops=int(2 * B * Cout * Cin * kk * OW),
        transcendentals=0,
        bytes_accessed=int(x_flat.size * 2 + w_taps.size * 2 + noise_flat.size * 4
                           + bias_col.size * 4 + B * Cout * OW * out_bytes),
    )

    out = pl.pallas_call(
        kernel,
        out_shape=jax.ShapeDtypeStruct((B, Cout, OW), out_dtype),
        grid_spec=pltpu.PrefetchScalarGridSpec(
            num_scalar_prefetch=0,
            grid=grid,
            in_specs=[
                pl.BlockSpec(memory_space=pltpu.MemorySpace.SMEM),             # noise weight
                pl.BlockSpec((1, kk, tco, Cin), lambda b, co: (b, 0, co, 0)),  # per-tap weights (streamed once / batch)
                pl.BlockSpec((1, Cin, HWx), lambda b, co: (b, 0, 0)),          # activations (resident per batch)
                pl.BlockSpec((1, 1, OW), lambda b, co: (b, 0, 0)),             # noise (resident per batch)
                pl.BlockSpec((tco, 1), lambda b, co: (co, 0)),                 # act bias
            ],
            out_specs=pl.BlockSpec((1, tco, OW), lambda b, co: (b, co, 0)),
        ),
        compiler_params=pltpu.CompilerParams(
            dimension_semantics=("parallel", "parallel"),
            vmem_limit_bytes=vmem_budget,
        ),
        cost_estimate=cost,
    )(noise_w, w_taps, x_flat, noise_flat, bias_col)

    # Drop the padded-width columns and restore (B, Cout, H, W).
    return out.reshape(B, Cout, H, Wp)[..., :W]


def styled_conv_reference(x, style, params, noise, *, demodulate=True, eps=1e-8):
    """Pure-JAX fp32 reference mirroring the PyTorch StyledConv forward."""
    B, Cin, H, W = x.shape
    conv_w = params['conv_weight']
    _, Cout, _, k, _ = conv_w.shape
    style_dim = params['mod_weight'].shape[1]
    mod_scale = 1.0 / math.sqrt(style_dim)
    s = style @ (params['mod_weight'] * mod_scale).T + params['mod_bias']
    conv_scale = 1.0 / math.sqrt(Cin * k * k)
    w = conv_scale * conv_w * s[:, None, :, None, None]
    if demodulate:
        demod = jax.lax.rsqrt(jnp.sum(w * w, axis=(2, 3, 4)) + eps)
        w = w * demod[:, :, None, None, None]
    x_g = x.reshape(1, B * Cin, H, W)
    w_g = w.reshape(B * Cout, Cin, k, k)
    out = jax.lax.conv_general_dilated(
        x_g, w_g, window_strides=(1, 1),
        padding=((k // 2, k // 2), (k // 2, k // 2)),
        dimension_numbers=('NCHW', 'OIHW', 'NCHW'),
        feature_group_count=B,
        precision=jax.lax.Precision.HIGHEST,
    ).reshape(B, Cout, H, W)
    out = out + params['noise_weight'][0] * noise
    out = out + params['act_bias'].reshape(1, Cout, 1, 1)
    return jnp.where(out >= 0, out, 0.2 * out) * math.sqrt(2.0)


if __name__ == "__main__":
    key = jax.random.PRNGKey(0)
    k_x, k_style, k_w, k_mod, k_noise, k_bias, _ = jax.random.split(key, 7)

    B, Cin, Cout, H, W = 2, 8, 8, 16, 16
    ksize = 3
    style_dim = 32

    x = jax.random.normal(k_x, (B, Cin, H, W), dtype=jnp.float32)
    style = jax.random.normal(k_style, (B, style_dim), dtype=jnp.float32)
    noise = jax.random.normal(k_noise, (B, 1, H, W), dtype=jnp.float32)

    # Parameter init per the PyTorch module __init__s.
    params = {
        'conv_weight': jax.random.normal(k_w, (1, Cout, Cin, ksize, ksize), jnp.float32),
        'mod_weight': jax.random.normal(k_mod, (Cin, style_dim), jnp.float32),
        'mod_bias': jnp.ones((Cin,), jnp.float32),       # EqualLinear bias_init=1
        'noise_weight': jnp.zeros((1,), jnp.float32),    # NoiseInjection: zeros(1)
        'act_bias': jnp.zeros((Cout,), jnp.float32),     # FusedLeakyReLU: zeros(channel)
    }

    # bf16 MXU operands vs fp32 reference -> tolerance reflects bf16 rounding only.
    TOL = 5e-2

    out = styled_conv_forward(x, style, params, noise)
    jax.block_until_ready(out)
    ref = styled_conv_reference(x, style, params, noise)
    assert out.shape == (B, Cout, H, W)
    assert jnp.allclose(out, ref, atol=TOL, rtol=TOL), \
        f"mismatch (default init): max abs err {float(jnp.max(jnp.abs(out - ref)))}"

    # Exercise nonzero noise weight and activation bias too.
    params_nz = dict(params)
    params_nz['noise_weight'] = jnp.array([0.3], jnp.float32)
    params_nz['act_bias'] = jax.random.normal(k_bias, (Cout,), jnp.float32) * 0.1
    out_nz = styled_conv_forward(x, style, params_nz, noise)
    jax.block_until_ready(out_nz)
    ref_nz = styled_conv_reference(x, style, params_nz, noise)
    assert jnp.allclose(out_nz, ref_nz, atol=TOL, rtol=TOL), \
        f"mismatch (nonzero init): max abs err {float(jnp.max(jnp.abs(out_nz - ref_nz)))}"

    print("KERNEL_OK")
</pallas_src>

<mosaic_0001>
module attributes {stable_mosaic.version = 11 : i64} {
  func.func @_styled_conv_kernel(%arg0: i32, %arg1: i32, %arg2: memref<1xf32, #tpu.memory_space<smem>>, %arg3: memref<1x9x8x8xbf16, #tpu.memory_space<vmem>>, %arg4: memref<1x8x326xbf16, #tpu.memory_space<vmem>>, %arg5: memref<1x1x288xf32, #tpu.memory_space<vmem>>, %arg6: memref<8x1xf32, #tpu.memory_space<vmem>>, %arg7: memref<1x8x288xf32, #tpu.memory_space<vmem>>) attributes {dimension_semantics = [#tpu.dimension_semantics<parallel>, #tpu.dimension_semantics<parallel>], iteration_bounds = array<i64: 2, 1>, scalar_prefetch = 0 : i64, scratch_operands = 0 : i64, tpu.core_type = #tpu.core_type<tc>, window_params = [{transform_indices = @transform_0, window_bounds = array<i64: 1>}, {transform_indices = @transform_1, window_bounds = array<i64: 1, 9, 8, 8>}, {transform_indices = @transform_2, window_bounds = array<i64: 1, 8, 326>}, {transform_indices = @transform_3, window_bounds = array<i64: 1, 1, 288>}, {transform_indices = @transform_4, window_bounds = array<i64: 8, 1>}, {transform_indices = @transform_5, window_bounds = array<i64: 1, 8, 288>}]} {
    %cst = arith.constant 0.000000e+00 : f32
    %0 = vector.broadcast %cst : f32 to vector<8x288xf32>
    %c0 = arith.constant 0 : index
    %c0_0 = arith.constant 0 : index
    %c0_1 = arith.constant 0 : index
    %1 = vector.load %arg4[%c0, %c0_0, %c0_1] : memref<1x8x326xbf16, #tpu.memory_space<vmem>>, vector<1x8x288xbf16>
    %2 = vector.shape_cast %1 : vector<1x8x288xbf16> to vector<8x288xbf16>
    %c0_2 = arith.constant 0 : index
    %c0_3 = arith.constant 0 : index
    %c0_4 = arith.constant 0 : index
    %c0_5 = arith.constant 0 : index
    %3 = vector.load %arg3[%c0_2, %c0_3, %c0_4, %c0_5] : memref<1x9x8x8xbf16, #tpu.memory_space<vmem>>, vector<1x1x8x8xbf16>
    %4 = vector.shape_cast %3 : vector<1x1x8x8xbf16> to vector<8x8xbf16>
    %cst_6 = arith.constant dense<0.000000e+00> : vector<8x288xf32>
    %5 = tpu.matmul %4, %2, %cst_6 {dimension_numbers = #tpu.dot_dimension_numbers<[1], [0], [0], [1], [0, 0, 1, 1], [], []>} : vector<8x8xbf16>, vector<8x288xbf16>, vector<8x288xf32> -> vector<8x288xf32>
    %6 = arith.addf %0, %5 : vector<8x288xf32>
    %c0_7 = arith.constant 0 : index
    %c0_8 = arith.constant 0 : index
    %c1 = arith.constant 1 : index
    %7 = vector.load %arg4[%c0_7, %c0_8, %c1] : memref<1x8x326xbf16, #tpu.memory_space<vmem>>, vector<1x8x288xbf16>
    %8 = vector.shape_cast %7 : vector<1x8x288xbf16> to vector<8x288xbf16>
    %c0_9 = arith.constant 0 : index
    %c1_10 = arith.constant 1 : index
    %c0_11 = arith.constant 0 : index
    %c0_12 = arith.constant 0 : index
    %9 = vector.load %arg3[%c0_9, %c1_10, %c0_11, %c0_12] : memref<1x9x8x8xbf16, #tpu.memory_space<vmem>>, vector<1x1x8x8xbf16>
    %10 = vector.shape_cast %9 : vector<1x1x8x8xbf16> to vector<8x8xbf16>
    %cst_13 = arith.constant dense<0.000000e+00> : vector<8x288xf32>
    %11 = tpu.matmul %10, %8, %cst_13 {dimension_numbers = #tpu.dot_dimension_numbers<[1], [0], [0], [1], [0, 0, 1, 1], [], []>} : vector<8x8xbf16>, vector<8x288xbf16>, vector<8x288xf32> -> vector<8x288xf32>
    %12 = arith.addf %6, %11 : vector<8x288xf32>
    %c0_14 = arith.constant 0 : index
    %c0_15 = arith.constant 0 : index
    %c2 = arith.constant 2 : index
    %13 = vector.load %arg4[%c0_14, %c0_15, %c2] : memref<1x8x326xbf16, #tpu.memory_space<vmem>>, vector<1x8x288xbf16>
    %14 = vector.shape_cast %13 : vector<1x8x288xbf16> to vector<8x288xbf16>
    %c0_16 = arith.constant 0 : index
    %c2_17 = arith.constant 2 : index
    %c0_18 = arith.constant 0 : index
    %c0_19 = arith.constant 0 : index
    %15 = vector.load %arg3[%c0_16, %c2_17, %c0_18, %c0_19] : memref<1x9x8x8xbf16, #tpu.memory_space<vmem>>, vector<1x1x8x8xbf16>
    %16 = vector.shape_cast %15 : vector<1x1x8x8xbf16> to vector<8x8xbf16>
    %cst_20 = arith.constant dense<0.000000e+00> : vector<8x288xf32>
    %17 = tpu.matmul %16, %14, %cst_20 {dimension_numbers = #tpu.dot_dimension_numbers<[1], [0], [0], [1], [0, 0, 1, 1], [], []>} : vector<8x8xbf16>, vector<8x288xbf16>, vector<8x288xf32> -> vector<8x288xf32>
    %18 = arith.addf %12, %17 : vector<8x288xf32>
    %c0_21 = arith.constant 0 : index
    %c0_22 = arith.constant 0 : index
    %c18 = arith.constant 18 : index
    %19 = vector.load %arg4[%c0_21, %c0_22, %c18] : memref<1x8x326xbf16, #tpu.memory_space<vmem>>, vector<1x8x288xbf16>
    %20 = vector.shape_cast %19 : vector<1x8x288xbf16> to vector<8x288xbf16>
    %c0_23 = arith.constant 0 : index
    %c3 = arith.constant 3 : index
    %c0_24 = arith.constant 0 : index
    %c0_25 = arith.constant 0 : index
    %21 = vector.load %arg3[%c0_23, %c3, %c0_24, %c0_25] : memref<1x9x8x8xbf16, #tpu.memory_space<vmem>>, vector<1x1x8x8xbf16>
    %22 = vector.shape_cast %21 : vector<1x1x8x8xbf16> to vector<8x8xbf16>
    %cst_26 = arith.constant dense<0.000000e+00> : vector<8x288xf32>
    %23 = tpu.matmul %22, %20, %cst_26 {dimension_numbers = #tpu.dot_dimension_numbers<[1], [0], [0], [1], [0, 0, 1, 1], [], []>} : vector<8x8xbf16>, vector<8x288xbf16>, vector<8x288xf32> -> vector<8x288xf32>
    %24 = arith.addf %18, %23 : vector<8x288xf32>
    %c0_27 = arith.constant 0 : index
    %c0_28 = arith.constant 0 : index
    %c19 = arith.constant 19 : index
    %25 = vector.load %arg4[%c0_27, %c0_28, %c19] : memref<1x8x326xbf16, #tpu.memory_space<vmem>>, vector<1x8x288xbf16>
    %26 = vector.shape_cast %25 : vector<1x8x288xbf16> to vector<8x288xbf16>
    %c0_29 = arith.constant 0 : index
    %c4 = arith.constant 4 : index
    %c0_30 = arith.constant 0 : index
    %c0_31 = arith.constant 0 : index
    %27 = vector.load %arg3[%c0_29, %c4, %c0_30, %c0_31] : memref<1x9x8x8xbf16, #tpu.memory_space<vmem>>, vector<1x1x8x8xbf16>
    %28 = vector.shape_cast %27 : vector<1x1x8x8xbf16> to vector<8x8xbf16>
    %cst_32 = arith.constant dense<0.000000e+00> : vector<8x288xf32>
    %29 = tpu.matmul %28, %26, %cst_32 {dimension_numbers = #tpu.dot_dimension_numbers<[1], [0], [0], [1], [0, 0, 1, 1], [], []>} : vector<8x8xbf16>, vector<8x288xbf16>, vector<8x288xf32> -> vector<8x288xf32>
    %30 = arith.addf %24, %29 : vector<8x288xf32>
    %c0_33 = arith.constant 0 : index
    %c0_34 = arith.constant 0 : index
    %c20 = arith.constant 20 : index
    %31 = vector.load %arg4[%c0_33, %c0_34, %c20] : memref<1x8x326xbf16, #tpu.memory_space<vmem>>, vector<1x8x288xbf16>
    %32 = vector.shape_cast %31 : vector<1x8x288xbf16> to vector<8x288xbf16>
    %c0_35 = arith.constant 0 : index
    %c5 = arith.constant 5 : index
    %c0_36 = arith.constant 0 : index
    %c0_37 = arith.constant 0 : index
    %33 = vector.load %arg3[%c0_35, %c5, %c0_36, %c0_37] : memref<1x9x8x8xbf16, #tpu.memory_space<vmem>>, vector<1x1x8x8xbf16>
    %34 = vector.shape_cast %33 : vector<1x1x8x8xbf16> to vector<8x8xbf16>
    %cst_38 = arith.constant dense<0.000000e+00> : vector<8x288xf32>
    %35 = tpu.matmul %34, %32, %cst_38 {dimension_numbers = #tpu.dot_dimension_numbers<[1], [0], [0], [1], [0, 0, 1, 1], [], []>} : vector<8x8xbf16>, vector<8x288xbf16>, vector<8x288xf32> -> vector<8x288xf32>
    %36 = arith.addf %30, %35 : vector<8x288xf32>
    %c0_39 = arith.constant 0 : index
    %c0_40 = arith.constant 0 : index
    %c36 = arith.constant 36 : index
    %37 = vector.load %arg4[%c0_39, %c0_40, %c36] : memref<1x8x326xbf16, #tpu.memory_space<vmem>>, vector<1x8x288xbf16>
    %38 = vector.shape_cast %37 : vector<1x8x288xbf16> to vector<8x288xbf16>
    %c0_41 = arith.constant 0 : index
    %c6 = arith.constant 6 : index
    %c0_42 = arith.constant 0 : index
    %c0_43 = arith.constant 0 : index
    %39 = vector.load %arg3[%c0_41, %c6, %c0_42, %c0_43] : memref<1x9x8x8xbf16, #tpu.memory_space<vmem>>, vector<1x1x8x8xbf16>
    %40 = vector.shape_cast %39 : vector<1x1x8x8xbf16> to vector<8x8xbf16>
    %cst_44 = arith.constant dense<0.000000e+00> : vector<8x288xf32>
    %41 = tpu.matmul %40, %38, %cst_44 {dimension_numbers = #tpu.dot_dimension_numbers<[1], [0], [0], [1], [0, 0, 1, 1], [], []>} : vector<8x8xbf16>, vector<8x288xbf16>, vector<8x288xf32> -> vector<8x288xf32>
    %42 = arith.addf %36, %41 : vector<8x288xf32>
    %c0_45 = arith.constant 0 : index
    %c0_46 = arith.constant 0 : index
    %c37 = arith.constant 37 : index
    %43 = vector.load %arg4[%c0_45, %c0_46, %c37] : memref<1x8x326xbf16, #tpu.memory_space<vmem>>, vector<1x8x288xbf16>
    %44 = vector.shape_cast %43 : vector<1x8x288xbf16> to vector<8x288xbf16>
    %c0_47 = arith.constant 0 : index
    %c7 = arith.constant 7 : index
    %c0_48 = arith.constant 0 : index
    %c0_49 = arith.constant 0 : index
    %45 = vector.load %arg3[%c0_47, %c7, %c0_48, %c0_49] : memref<1x9x8x8xbf16, #tpu.memory_space<vmem>>, vector<1x1x8x8xbf16>
    %46 = vector.shape_cast %45 : vector<1x1x8x8xbf16> to vector<8x8xbf16>
    %cst_50 = arith.constant dense<0.000000e+00> : vector<8x288xf32>
    %47 = tpu.matmul %46, %44, %cst_50 {dimension_numbers = #tpu.dot_dimension_numbers<[1], [0], [0], [1], [0, 0, 1, 1], [], []>} : vector<8x8xbf16>, vector<8x288xbf16>, vector<8x288xf32> -> vector<8x288xf32>
    %48 = arith.addf %42, %47 : vector<8x288xf32>
    %c0_51 = arith.constant 0 : index
    %c0_52 = arith.constant 0 : index
    %c38 = arith.constant 38 : index
    %49 = vector.load %arg4[%c0_51, %c0_52, %c38] : memref<1x8x326xbf16, #tpu.memory_space<vmem>>, vector<1x8x288xbf16>
    %50 = vector.shape_cast %49 : vector<1x8x288xbf16> to vector<8x288xbf16>
    %c0_53 = arith.constant 0 : index
    %c8 = arith.constant 8 : index
    %c0_54 = arith.constant 0 : index
    %c0_55 = arith.constant 0 : index
    %51 = vector.load %arg3[%c0_53, %c8, %c0_54, %c0_55] : memref<1x9x8x8xbf16, #tpu.memory_space<vmem>>, vector<1x1x8x8xbf16>
    %52 = vector.shape_cast %51 : vector<1x1x8x8xbf16> to vector<8x8xbf16>
    %cst_56 = arith.constant dense<0.000000e+00> : vector<8x288xf32>
    %53 = tpu.matmul %52, %50, %cst_56 {dimension_numbers = #tpu.dot_dimension_numbers<[1], [0], [0], [1], [0, 0, 1, 1], [], []>} : vector<8x8xbf16>, vector<8x288xbf16>, vector<8x288xf32> -> vector<8x288xf32>
    %54 = arith.addf %48, %53 : vector<8x288xf32>
    %c0_57 = arith.constant 0 : index
    %55 = memref.load %arg2[%c0_57] : memref<1xf32, #tpu.memory_space<smem>>
    %c0_58 = arith.constant 0 : index
    %c0_59 = arith.constant 0 : index
    %c0_60 = arith.constant 0 : index
    %56 = vector.load %arg5[%c0_58, %c0_59, %c0_60] : memref<1x1x288xf32, #tpu.memory_space<vmem>>, vector<1x1x288xf32>
    %57 = vector.shape_cast %56 : vector<1x1x288xf32> to vector<1x288xf32>
    %58 = vector.broadcast %55 : f32 to vector<1x288xf32>
    %59 = arith.mulf %58, %57 : vector<1x288xf32>
    %60 = vector.broadcast %59 : vector<1x288xf32> to vector<8x288xf32>
    %61 = arith.addf %54, %60 : vector<8x288xf32>
    %c0_61 = arith.constant 0 : index
    %c0_62 = arith.constant 0 : index
    %62 = vector.load %arg6[%c0_61, %c0_62] : memref<8x1xf32, #tpu.memory_space<vmem>>, vector<8x1xf32>
    %63 = vector.broadcast %62 : vector<8x1xf32> to vector<8x288xf32>
    %64 = arith.addf %61, %63 : vector<8x288xf32>
    %cst_63 = arith.constant 0.000000e+00 : f32
    %65 = vector.broadcast %cst_63 : f32 to vector<8x288xf32>
    %66 = arith.cmpf oge, %64, %65 : vector<8x288xf32>
    %cst_64 = arith.constant 2.000000e-01 : f32
    %67 = vector.broadcast %cst_64 : f32 to vector<8x288xf32>
    %68 = arith.mulf %67, %64 : vector<8x288xf32>
    %69 = arith.select %66, %64, %68 : vector<8x288xi1>, vector<8x288xf32>
    %cst_65 = arith.constant 1.41421354 : f32
    %70 = vector.broadcast %cst_65 : f32 to vector<8x288xf32>
    %71 = arith.mulf %69, %70 : vector<8x288xf32>
    %72 = vector.shape_cast %71 : vector<8x288xf32> to vector<1x8x288xf32>
    %c0_66 = arith.constant 0 : index
    %c0_67 = arith.constant 0 : index
    %c0_68 = arith.constant 0 : index
    %73 = vector.load %arg7[%c0_66, %c0_67, %c0_68] : memref<1x8x288xf32, #tpu.memory_space<vmem>>, vector<1x8x288xf32>
    tpu.vector_store %arg7[%c0_66, %c0_67, %c0_68], %72 {strides = array<i32>} : memref<1x8x288xf32, #tpu.memory_space<vmem>>, vector<1x8x288xf32>,
    return
  }
  func.func @transform_0(%arg0: i32, %arg1: i32) -> i32 {
    %c0_i32 = arith.constant 0 : i32
    %c0_i32_0 = arith.constant 0 : i32
    return %c0_i32 : i32
  }
  func.func @transform_1(%arg0: i32, %arg1: i32) -> (i32, i32, i32, i32) {
    %c0_i32 = arith.constant 0 : i32
    %c0_i32_0 = arith.constant 0 : i32
    %c0_i32_1 = arith.constant 0 : i32
    return %arg0, %c0_i32, %arg1, %c0_i32_0 : i32, i32, i32, i32
  }
  func.func @transform_2(%arg0: i32, %arg1: i32) -> (i32, i32, i32) {
    %c0_i32 = arith.constant 0 : i32
    %c0_i32_0 = arith.constant 0 : i32
    %c0_i32_1 = arith.constant 0 : i32
    return %arg0, %c0_i32, %c0_i32_0 : i32, i32, i32
  }
  func.func @transform_3(%arg0: i32, %arg1: i32) -> (i32, i32, i32) {
    %c0_i32 = arith.constant 0 : i32
    %c0_i32_0 = arith.constant 0 : i32
    %c0_i32_1 = arith.constant 0 : i32
    return %arg0, %c0_i32, %c0_i32_0 : i32, i32, i32
  }
  func.func @transform_4(%arg0: i32, %arg1: i32) -> (i32, i32) {
    %c0_i32 = arith.constant 0 : i32
    %c0_i32_0 = arith.constant 0 : i32
    return %arg1, %c0_i32 : i32, i32
  }
  func.func @transform_5(%arg0: i32, %arg1: i32) -> (i32, i32, i32) {
    %c0_i32 = arith.constant 0 : i32
    %c0_i32_0 = arith.constant 0 : i32
    return %arg0, %arg1, %c0_i32 : i32, i32, i32
  }
}

</mosaic_0001>

<bundles_post_ra>
// kernel: tpu_custom_call.1
= control target key start
LH: loop header
LB: loop body
LE: loop exit
PB: predicated region body
PF: predicated region fallthrough
CT: control target
= control target key end

     0   :  { %s1989_s0 = inlined_call_operand.<no memory space> [shape: f32[1], index: 0, kind: input, shape index: {}]   ;;  %s1990_s1 = inlined_call_operand.vmem [shape: bf16[2,9,8,8], index: 1, kind: input, shape index: {}]   ;;  %s1991_s2 = inlined_call_operand.vmem [shape: bf16[2,8,326], index: 2, kind: input, shape index: {}]   ;;  %s1992_s3 = inlined_call_operand.vmem [shape: f32[2,1,288], index: 3, kind: input, shape index: {}]   ;;  %s1993_s4 = inlined_call_operand.vmem [shape: f32[8,1], index: 4, kind: input, shape index: {}]   ;;  %s1994_s5 = inlined_call_operand.hbm [shape: f32[2,8,288], index: 5, kind: output, shape index: {}]  }
   0x1   :  { %10 = sst [smem:[#allocation2]] %s1989_s0 }
   0x2   :  { %11 = vsyncpa [#allocation4], 0 }
   0x3   :  { %13 = vsyncpa [#allocation4 + $0x1], 0  ;;  %s1764_s20 = smov 0   ;;  %s1766_s21 = smov 0  }
   0x4   :  { %s1768_s22 = smov 0   ;;  %s1770_s23 = smov 0  }
   0x5   :  { %s1772_s24 = smov 0   ;;  %s1774_s25 = smov 0  }
   0x6 LB: > { %s1443_s0 = sadd.s32 4294967295, %s1717_s25   ;;  %s1444_s26 = sadd.s32 4294967294, %s1717_s25   ;;  %s1717_s25 = sphi %s1774_s25, %s19_s25   ;;  %s1713_s24 = sphi %s1772_s24, %s2001_s24   ;;  %s1709_s23 = sphi %s1770_s23, %s2000_s23   ;;  %s1705_s22 = sphi %s1768_s22, %s1999_s22   ;;  %s1701_s21 = sphi %s1766_s21, %s1998_s21   ;;  %s1697_s20 = sphi %s1764_s20, %s1997_s20  }
   0x7   : > { %s31_s27 = sadd.s32 1, %s1713_s24  ;;  %s167_s28 = sadd.s32 1, %s1705_s22 }
   0x8   : > { %p33_p0 = scmp.ge.s32.totalorder %s31_s27, 2  ;;  %p177_p1 = scmp.ne.s32.totalorder %s1705_s22, %s1701_s21 }
   0x9   : > { %p178_p2 = scmp.eq.s32.totalorder %s1443_s0, 1  ;;  %p183_p3 = scmp.ne.s32.totalorder %s1701_s21, %s1697_s20 }
   0xa   : > { %s2003_s27 = smov (%p33_p0, %s31_s27), 0  ;;  %p184_p5 = scmp.eq.s32.totalorder %s1444_s26, 1 }
   0xb   : > { %p1804_p4 = por %p178_p2, %p177_p1  ;;  %s162_s30 = ssub.s32 %s1713_s24, %s2003_s27 }
   0xc   : > { %p1448_p6 = scmp.ge.s32.totalorder %s1717_s25, 1  ;;  %p165_p7 = scmp.eq.s32.totalorder %s162_s30, 0 }
   0xd   : > { %p1811_p8 = por %p184_p5, %p183_p3  ;;  %p238_p9 = scmp.lt.s32.totalorder %s1717_s25, 3 }
   0xe   : > { %s1817_s7 = scalar_select %p165_p7, %s1705_s22, %s167_s28  }
   0xf   : > { %p239_p10 = pnand %p1448_p6, %p238_p9 }
  0x10   : > { %p282_p11 = scmp.lt.s32.totalorder (!%p239_p10), %s1709_s23, 1  ;;  %v1719_v0 = vmov (!%p239_p10), 0.0   ;;  %vm1720_vm0 = vmmov (!%p239_p10), 0   ;;  %v1721_v1 = vmov (!%p239_p10), 0   ;;  %s1722_s13 = smov (!%p239_p10), 127   ;;  %v1286_v6 = vld [vmem:[%s1993_s4] sm:$0xff] (!%p239_p10) }
  0x11   : > { %242 = sbr.rel (%p239_p10) target bundleno = 458 (0x1ca), region = 40  ;;  %1510 = vmatprep.subr.bf16.mxu1 (!%p239_p10), %v1719_v0  ;;  %1512 = vmatprep.mubr.msk.bf16.mxu1 (!%p239_p10), %vm1720_vm0, %v1719_v0  ;;  %s1723_s14 = smov (!%p239_p10), 126   ;;  %vm330_vm1 = vcmask (!%p239_p10), 1043456   ;;  %vm326_vm2 = vcmask (!%p239_p10), 64512   ;;  %vm323_vm3 = vcmask (!%p239_p10), 1039360   ;;  %vm522_vm4 = vcmask (!%p239_p10), 1031168  }
  0x12   : > { %372 = vmatprep.mubr.bf16.mxu0 (!%p239_p10), %v1721_v1  ;;  %1635 = vset.pattern.permute.xlu0 (!%p239_p10), %v1721_v1  ;;  %s1724_s15 = smov (!%p239_p10), 110   ;;  %s1725_s16 = smov (!%p239_p10), 109   ;;  %vm629_vm5 = vcmask (!%p239_p10), 900096   ;;  %vm736_vm6 = vcmask (!%p239_p10), 891904   ;;  %vm843_vm7 = vcmask (!%p239_p10), 883712   ;;  %vm950_vm8 = vcmask (!%p239_p10), 752640  }
  0x13   : > { %s1726_s17 = smov (!%p239_p10), 108   ;;  %s1727_s18 = smov (!%p239_p10), 92   ;;  %vm1057_vm9 = vcmask (!%p239_p10), 744448   ;;  %vm1164_vm10 = vcmask (!%p239_p10), 736256   ;;  %vm1309_vm12 = vcmask (!%p239_p10), 261120  }
  0x14   : > { %s1728_s19 = smov (!%p239_p10), 91   ;;  %s1729_s0 = smov (!%p239_p10), 90  }
  0x15   : > { %s1730_s10 = smov (!%p239_p10), [#allocation3]  }
  0x18   : > { %s1824_s8 = scalar_select %p282_p11, %s1709_s23, 1 }
  0x1a   : > { %s1566_s9 = smul.u32 12, %s1824_s8 }
  0x1b   : > { %s1565_s30 = smul.u32 36, %s1824_s8 }
  0x1c   : > { %s294_s12 = scalar_lea.vmem %s1991_s2, %s1566_s9 }
  0x1d   : > { %v1636_v2 = vld [vmem:[%s294_s12 + $0x8] ss:$0 sps:$4 sm:$0xff]   ;;  %v304_v3 = vld [vmem:[%s294_s12] sm:$0xff]  ;;  %s1839_s11 = scalar_lea.vmem %s1990_s1, %s1565_s30  ;;  %s1263_s12 = sld [smem:[#allocation2]] }
  0x1e   : > { %v1452_v4 = vcombine.low %v304_v3, %v304_v3  ;;  %321 = vrot.lane.b32.xlu1 %v1636_v2, %s1722_s13  ;;  %v1453_v5 = vcombine.high %v304_v3, %v304_v3  ;;  %v1451_v10 = vld [vmem:[%s1839_s11 + $0x4] sm:$0xf]  ;;  %v431_v11 = vsel %vm330_vm1, %v1636_v2, 0  ;;  %v306_v20 = vld [vmem:[%s1839_s11] sm:$0xf] }
  0x1f   : > { %v1461_v29 = vld [vmem:[%s1839_s11 + $0x8] sm:$0xf]  ;;  %v1465_v37 = vld [vmem:[%s1839_s11 + $0xc] sm:$0xf]  ;;  %v1469_v45 = vld [vmem:[%s1839_s11 + $0x10] sm:$0xf] }
  0x20   : > { %317 = vrot.lane.b32.xlu0 %v1452_v4, %s1722_s13  ;;  %v425_v18 = vsel %vm330_vm1, %v1452_v4, 0  ;;  %v1473_v53 = vld [vmem:[%s1839_s11 + $0x14] sm:$0xf]  ;;  %v1477_v61 = vld [vmem:[%s1839_s11 + $0x18] sm:$0xf] }
  0x22   : > { %516 = vrot.lane.b32.xlu1 %v1452_v4, %s1723_s14 }
  0x24   : > { %319 = vrot.lane.b32.xlu0 %v1453_v5, %s1722_s13  ;;  %s1567_s13 = smul.u32 3, %s1824_s8  ;;  %s279_s8 = sand.u32 1, %s1701_s21  }
  0x26   : > { %520 = vrot.lane.b32.xlu1 %v1636_v2, %s1723_s14 }
  0x28   : > { %518 = vrot.lane.b32.xlu0 %v1453_v5, %s1723_s14 }
  0x2a   : > { %625 = vrot.lane.b32.xlu1 %v1453_v5, %s1724_s15 }
  0x2c   : > { %623 = vrot.lane.b32.xlu0 %v1452_v4, %s1724_s15 }
  0x2e   : > { %730 = vrot.lane.b32.xlu1 %v1452_v4, %s1725_s16 }
  0x30   : > { %627 = vrot.lane.b32.xlu0 %v1636_v2, %s1724_s15 }
  0x32   : > { %734 = vrot.lane.b32.xlu1 %v1636_v2, %s1725_s16 }
  0x34   : > { %732 = vrot.lane.b32.xlu0 %v1453_v5, %s1725_s16  ;;  %s298_s16 = scalar_lea.vmem %s1992_s3, %s1567_s13 }
  0x36   : > { %839 = vrot.lane.b32.xlu1 %v1453_v5, %s1726_s17 }
  0x38   : > { %837 = vrot.lane.b32.xlu0 %v1452_v4, %s1726_s17 }
  0x3a   : > { %944 = vrot.lane.b32.xlu1 %v1452_v4, %s1727_s18 }
  0x3c   : > { %841 = vrot.lane.b32.xlu0 %v1636_v2, %s1726_s17  ;;  %s1564_s17 = smul.u32 24, %s279_s8 }
  0x3e   : > { %948 = vrot.lane.b32.xlu1 %v1636_v2, %s1727_s18 }
  0x40   : > { %946 = vrot.lane.b32.xlu0 %v1453_v5, %s1727_s18  ;;  %s281_s18 = scalar_lea.vmem [#allocation3], %s1564_s17 }
  0x42   : > { %1053 = vrot.lane.b32.xlu1 %v1453_v5, %s1728_s19 }
  0x44   : > { %1051 = vrot.lane.b32.xlu0 %v1452_v4, %s1728_s19 }
  0x46   : > { %1158 = vrot.lane.b32.xlu1 %v1452_v4, %s1729_s0 }
  0x48   : > { %1055 = vrot.lane.b32.xlu0 %v1636_v2, %s1728_s19  ;;  %s1568_s19 = smul.u32 384, %s1709_s23  ;;  %s1312_s23 = scalar_lea.sflag [#allocation4], %s279_s8 }
  0x4a   : > { %1162 = vrot.lane.b32.xlu1 %v1636_v2, %s1729_s0  ;;  %s1940_s30 = scalar_lea.hbm %s1994_s5, %s1568_s19 }
  0x4c   : > { %1160 = vrot.lane.b32.xlu0 %v1453_v5, %s1729_s0  ;;  %s1328_s0 = sshll.u32 %s281_s18, 4  ;;  %s1942_s0 = int_to_ptr.vmem [resolvable:$true] %s1328_s0 }
  0x4d   : > { %s1639_s9 = scalar_lea.vmem %s1942_s0, 384 }
  0x4e   : > { %p1640_p12 = scmp.ne.s32.totalorder %s1942_s0, %s1639_s9 }
  0x50   : > { %1289 = vperm.xlu0 %1635, %v1286_v6   ;;  %v1481_v6 = vld [vmem:[%s1839_s11 + $0x1c] sm:$0xf]  ;;  %p1641_p13 = pnand %p1640_p12, %p1804_p4 }
  0x52   : > { %p1642_p0 = pneg %p1641_p13 }
  0x90   : > { %v322_v7 = vpop.permute.xlu1 %321 }
  0x91   : > { %v338_v9 = vsel %vm330_vm1, %v322_v7, 0 }
  0x92   : > { %v318_v8 = vpop.permute.xlu0 %317  ;;  %1511 = vmatpush3.bf16.msra.mxu1 %v338_v9 }
  0x93   : > { %1516 = vmatprep.subr.bf16.mxu1 %v1719_v0 }
  0x94   : > { %v517_v12 = vpop.permute.xlu1 %516 }
  0x95   : > { %1513 = vmatmul.mubr.msk.bf16.vlgmr.msra.gmra.mrb[0].mxu1 %vm326_vm2, %v1451_v10 }
  0x96   : > { %v320_v13 = vpop.permute.xlu0 %319  ;;  %1517 = vmatpush3.bf16.msra.mxu1 %v431_v11  ;;  %1518 = vmatprep.mubr.msk.bf16.mxu1 %vm1720_vm0, %v1719_v0  ;;  %v1485_v11 = vld [vmem:[%s1839_s11 + $0x20] sm:$0xf]  ;;  %s1643_s11 = sshll.u32 %s1730_s10, 4  ;;  %s1644_s11 = int_to_ptr.vmem [resolvable:$false] %s1643_s11 }
  0x97   : > { %v325_v14 = vsel %vm323_vm3, %v320_v13, %v322_v7  ;;  %v324_v15 = vsel %vm323_vm3, %v318_v8, %v320_v13  ;;  %1522 = vmatprep.subr.bf16.mxu1 %v1719_v0  ;;  %p1646_p1 = scmp.lt.s32.totalorder %s1942_s0, %s1644_s11 }
  0x98   : > { %1455 = vmatprep.subr.msk.bf16.mxu0 %vm330_vm1, %v325_v14  ;;  %v332_v16 = vsel %vm330_vm1, %v324_v15, 0  ;;  %v521_v17 = vpop.permute.xlu1 %520 }
  0x99   : > { %341 = vmatpush1.bf16.msra.mxu0 %v332_v16  ;;  %v535_v22 = vsel %vm330_vm1, %v521_v17, 0 }
  0x9a   : > { %1458 = vmatprep.subr.msk.bf16.mxu0 %vm330_vm1, %v1453_v5  ;;  %v519_v19 = vpop.permute.xlu0 %518 }
  0x9b   : > { %v524_v21 = vsel %vm522_vm4, %v519_v19, %v521_v17  ;;  %v523_v25 = vsel %vm522_vm4, %v517_v12, %v519_v19 }
  0x9c   : > { %1456 = vmatmul.mubr.msk.bf16.vlgmr.msra.gmra.mrb[0].mxu0 %vm326_vm2, %v1451_v10  ;;  %v626_v23 = vpop.permute.xlu1 %625  ;;  %v529_v26 = vsel %vm330_vm1, %v523_v25, 0 }
  0x9d   : > { %434 = vmatpush1.bf16.msra.mxu0 %v425_v18  ;;  %465 = vmatprep.mubr.bf16.mxu0 %v1721_v1 }
  0x9e   : > { %1519 = vmatmul.mubr.msk.bf16.vlgmr.msra.gmra.mrb[4].mxu1 %vm326_vm2, %v306_v20  ;;  %1462 = vmatprep.subr.msk.bf16.mxu0 %vm330_vm1, %v524_v21  ;;  %v624_v24 = vpop.permute.xlu0 %623 }
  0x9f   : > { %1523 = vmatpush3.bf16.msra.mxu1 %v535_v22  ;;  %1524 = vmatprep.mubr.msk.bf16.mxu1 %vm1720_vm0, %v1719_v0  ;;  %v630_v33 = vsel %vm629_vm5, %v624_v24, %v626_v23 }
  0xa0   : > { %1528 = vmatprep.subr.bf16.mxu1 %v1719_v0  ;;  %v731_v28 = vpop.permute.xlu1 %730  ;;  %v636_v35 = vsel %vm330_vm1, %v630_v33, 0 }
  0xa2   : > { %v628_v27 = vpop.permute.xlu0 %627 }
  0xa3   : > { %v631_v30 = vsel %vm629_vm5, %v626_v23, %v628_v27  ;;  %v642_v31 = vsel %vm330_vm1, %v628_v27, 0 }
  0xa4   : > { %1459 = vmatmul.mubr.msk.bf16.vlgmr.msra.gmra.mrb[4].mxu0 %vm326_vm2, %v306_v20  ;;  %v735_v34 = vpop.permute.xlu1 %734 }
  0xa5   : > { %538 = vmatpush1.bf16.msra.mxu0 %v529_v26  ;;  %569 = vmatprep.mubr.bf16.mxu0 %v1721_v1  ;;  %v749_v39 = vsel %vm330_vm1, %v735_v34, 0 }
  0xa6   : > { %1525 = vmatmul.mubr.msk.bf16.vlgmr.msra.gmra.mrb[8].mxu1 %vm326_vm2, %v1461_v29  ;;  %1466 = vmatprep.subr.msk.bf16.mxu0 %vm330_vm1, %v631_v30  ;;  %v733_v32 = vpop.permute.xlu0 %732 }
  0xa7   : > { %1529 = vmatpush3.bf16.msra.mxu1 %v642_v31  ;;  %1530 = vmatprep.mubr.msk.bf16.mxu1 %vm1720_vm0, %v1719_v0  ;;  %v738_v38 = vsel %vm736_vm6, %v733_v32, %v735_v34  ;;  %v737_v41 = vsel %vm736_vm6, %v731_v28, %v733_v32 }
  0xa8   : > { %1534 = vmatprep.subr.bf16.mxu1 %v1719_v0  ;;  %v840_v40 = vpop.permute.xlu1 %839  ;;  %v743_v43 = vsel %vm330_vm1, %v737_v41, 0 }
  0xaa   : > { %v838_v36 = vpop.permute.xlu0 %837 }
  0xab   : > { %v844_v49 = vsel %vm843_vm7, %v838_v36, %v840_v40 }
  0xac   : > { %1463 = vmatmul.mubr.msk.bf16.vlgmr.msra.gmra.mrb[8].mxu0 %vm326_vm2, %v1461_v29  ;;  %v945_v44 = vpop.permute.xlu1 %944  ;;  %v850_v51 = vsel %vm330_vm1, %v844_v49, 0 }
  0xad   : > { %645 = vmatpush1.bf16.msra.mxu0 %v636_v35  ;;  %676 = vmatprep.mubr.bf16.mxu0 %v1721_v1 }
  0xae   : > { %1531 = vmatmul.mubr.msk.bf16.vlgmr.msra.gmra.mrb[12].mxu1 %vm326_vm2, %v1465_v37  ;;  %1470 = vmatprep.subr.msk.bf16.mxu0 %vm330_vm1, %v738_v38  ;;  %v842_v42 = vpop.permute.xlu0 %841 }
  0xaf   : > { %1535 = vmatpush3.bf16.msra.mxu1 %v749_v39  ;;  %1536 = vmatprep.mubr.msk.bf16.mxu1 %vm1720_vm0, %v1719_v0  ;;  %v845_v46 = vsel %vm843_vm7, %v840_v40, %v842_v42  ;;  %v856_v47 = vsel %vm330_vm1, %v842_v42, 0 }
  0xb0   : > { %1540 = vmatprep.subr.bf16.mxu1 %v1719_v0  ;;  %v949_v50 = vpop.permute.xlu1 %948 }
  0xb1   : > { %v963_v55 = vsel %vm330_vm1, %v949_v50, 0 }
  0xb2   : > { %v947_v48 = vpop.permute.xlu0 %946 }
  0xb3   : > { %v952_v54 = vsel %vm950_vm8, %v947_v48, %v949_v50  ;;  %v951_v57 = vsel %vm950_vm8, %v945_v44, %v947_v48 }
  0xb4   : > { %1467 = vmatmul.mubr.msk.bf16.vlgmr.msra.gmra.mrb[12].mxu0 %vm326_vm2, %v1465_v37  ;;  %v1054_v56 = vpop.permute.xlu1 %1053  ;;  %v957_v59 = vsel %vm330_vm1, %v951_v57, 0 }
  0xb5   : > { %752 = vmatpush1.bf16.msra.mxu0 %v743_v43  ;;  %783 = vmatprep.mubr.bf16.mxu0 %v1721_v1 }
  0xb6   : > { %1537 = vmatmul.mubr.msk.bf16.vlgmr.msra.gmra.mrb[16].mxu1 %vm326_vm2, %v1469_v45  ;;  %1474 = vmatprep.subr.msk.bf16.mxu0 %vm330_vm1, %v845_v46  ;;  %v1052_v52 = vpop.permute.xlu0 %1051 }
  0xb7   : > { %1541 = vmatpush3.bf16.msra.mxu1 %v856_v47  ;;  %1542 = vmatprep.mubr.msk.bf16.mxu1 %vm1720_vm0, %v1719_v0  ;;  %v1058_v2 = vsel %vm1057_vm9, %v1052_v52, %v1054_v56 }
  0xb8   : > { %1546 = vmatprep.subr.bf16.mxu1 %v1719_v0  ;;  %v1159_v60 = vpop.permute.xlu1 %1158  ;;  %v1064_v5 = vsel %vm330_vm1, %v1058_v2, 0 }
  0xba   : > { %v1056_v58 = vpop.permute.xlu0 %1055 }
  0xbb   : > { %v1059_v62 = vsel %vm1057_vm9, %v1054_v56, %v1056_v58  ;;  %v1070_v63 = vsel %vm330_vm1, %v1056_v58, 0 }
  0xbc   : > { %1471 = vmatmul.mubr.msk.bf16.vlgmr.msra.gmra.mrb[16].mxu0 %vm326_vm2, %v1469_v45  ;;  %v1163_v4 = vpop.permute.xlu1 %1162 }
  0xbd   : > { %859 = vmatpush1.bf16.msra.mxu0 %v850_v51  ;;  %890 = vmatprep.mubr.bf16.mxu0 %v1721_v1  ;;  %v1177_v8 = vsel %vm330_vm1, %v1163_v4, 0 }
  0xbe   : > { %1543 = vmatmul.mubr.msk.bf16.vlgmr.msra.gmra.mrb[20].mxu1 %vm326_vm2, %v1473_v53  ;;  %1478 = vmatprep.subr.msk.bf16.mxu0 %vm330_vm1, %v952_v54  ;;  %v1161_v3 = vpop.permute.xlu0 %1160 }
  0xbf   : > { %1547 = vmatpush3.bf16.msra.mxu1 %v963_v55  ;;  %1548 = vmatprep.mubr.msk.bf16.mxu1 %vm1720_vm0, %v1719_v0  ;;  %v1166_v7 = vsel %vm1164_vm10, %v1161_v3, %v1163_v4  ;;  %v1165_v9 = vsel %vm1164_vm10, %v1159_v60, %v1161_v3 }
  0xc0   : > { %1552 = vmatprep.subr.bf16.mxu1 %v1719_v0  ;;  %v1171_v10 = vsel %vm330_vm1, %v1165_v9, 0 }
  0xc4   : > { %1475 = vmatmul.mubr.msk.bf16.vlgmr.msra.gmra.mrb[20].mxu0 %vm326_vm2, %v1473_v53 }
  0xc5   : > { %966 = vmatpush1.bf16.msra.mxu0 %v957_v59  ;;  %997 = vmatprep.mubr.bf16.mxu0 %v1721_v1 }
  0xc6   : > { %1549 = vmatmul.mubr.msk.bf16.vlgmr.msra.gmra.mrb[24].mxu1 %vm326_vm2, %v1477_v61  ;;  %1482 = vmatprep.subr.msk.bf16.mxu0 %vm330_vm1, %v1059_v62 }
  0xc7   : > { %1553 = vmatpush3.bf16.msra.mxu1 %v1070_v63  ;;  %1554 = vmatprep.mubr.msk.bf16.mxu1 %vm1720_vm0, %v1719_v0 }
  0xc8   : > { %1558 = vmatprep.subr.bf16.mxu1 %v1719_v0 }
  0xcc   : > { %1479 = vmatmul.mubr.msk.bf16.vlgmr.msra.gmra.mrb[24].mxu0 %vm326_vm2, %v1477_v61 }
  0xcd   : > { %1073 = vmatpush1.bf16.msra.mxu0 %v1064_v5  ;;  %1104 = vmatprep.mubr.bf16.mxu0 %v1721_v1 }
  0xce   : > { %1555 = vmatmul.mubr.msk.bf16.vlgmr.msra.gmra.mrb[28].mxu1 %vm326_vm2, %v1481_v6  ;;  %1486 = vmatprep.subr.msk.bf16.mxu0 %vm330_vm1, %v1166_v7 }
  0xcf   : > { %1559 = vmatpush3.bf16.msra.mxu1 %v1177_v8  ;;  %1560 = vmatprep.mubr.msk.bf16.mxu1 %vm1720_vm0, %v1719_v0 }
  0xd4   : > { %1483 = vmatmul.mubr.msk.bf16.vlgmr.msra.gmra.mrb[28].mxu0 %vm326_vm2, %v1481_v6 }
  0xd5   : > { %1180 = vmatpush1.bf16.msra.mxu0 %v1171_v10  ;;  %1211 = vmatprep.mubr.bf16.mxu0 %v1721_v1 }
  0xd6   : > { %1561 = vmatmul.mubr.msk.bf16.vlgmr.msra.gmra.mrb[32].mxu1 %vm326_vm2, %v1485_v11 }
  0xdc   : > { %1487 = vmatmul.mubr.msk.bf16.vlgmr.msra.gmra.mrb[32].mxu0 %vm326_vm2, %v1485_v11 }
 0x168   : > { %v415_v12 = vpop.f32.mrb[0].mxu1 }
 0x169   : > { %v1514_v13 = vpop.f32.mrb[1].mxu1 }
 0x16a   : > { %v418_v14 = vpop.f32.mrb[2].mxu1 }
 0x16b   : > { %v1515_v15 = vpop.f32.mrb[3].mxu1 }
 0x16f   : > { %v374_v16 = vpop.f32.mrb[0].mxu0 }
 0x170   : > { %v376_v17 = vpop.f32.mrb[1].mxu0 }
 0x171   : > { %v378_v18 = vpop.f32.mrb[2].mxu0  ;;  %v508_v0 = vpop.f32.mrb[4].mxu1 }
 0x172   : > { %v379_v19 = vpop.f32.mrb[3].mxu0  ;;  %v509_v20 = vadd.f32 %v508_v0, %v415_v12  ;;  %v1520_v21 = vpop.f32.mrb[5].mxu1 }
 0x173   : > { %v511_v22 = vpop.f32.mrb[6].mxu1 }
 0x174   : > { %v1521_v23 = vpop.f32.mrb[7].mxu1 }
 0x175   : > { %v1264_v23 = vld [vmem:[%s298_s16] sm:$0x7] }
 0x177   : > { %v467_v24 = vpop.f32.mrb[4].mxu0 }
 0x178   : > { %v468_v25 = vadd.f32 %v467_v24, %v374_v16  ;;  %v469_v1 = vpop.f32.mrb[5].mxu0  ;;  %v1268_v16 = vlaneseq  ;;  %v1265_v24 = vstv %s1263_s12  ;;  %s1645_s12 = scalar_lea.vmem %s1644_s11, 768 }
 0x179   : > { %v470_v26 = vadd.f32 %v469_v1, %v376_v17  ;;  %v471_v27 = vpop.f32.mrb[6].mxu0  ;;  %v612_v28 = vpop.f32.mrb[8].mxu1  ;;  %p1647_p2 = scmp.lt.s32.totalorder %s1645_s12, %s1639_s9 }
 0x17a   : > { %v472_v29 = vpop.f32.mrb[7].mxu0  ;;  %v620_v30 = vadd.f32 %v612_v28, %v509_v20  ;;  %v1526_v31 = vpop.f32.mrb[9].mxu1  ;;  %v1269_v19 = vshrl.u32 %v1268_v16, 7 }
 0x17b   : > { %v615_v32 = vpop.f32.mrb[10].mxu1  ;;  %v1266_v29 = vmul.f32 %v1265_v24, %v1264_v23  ;;  %p1648_p3 = por %p1647_p2, %p1646_p1 }
 0x17c   : > { %v1527_v33 = vpop.f32.mrb[11].mxu1 }
 0x17d   : > { %p1649_p5 = pnand %p1648_p3, %p1642_p0 }
 0x17f   : > { %v571_v34 = vpop.f32.mrb[8].mxu0 }
 0x180   : > { %v618_v35 = vadd.f32 %v571_v34, %v468_v25  ;;  %v573_v36 = vpop.f32.mrb[9].mxu0 }
 0x181   : > { %v619_v37 = vadd.f32 %v573_v36, %v470_v26  ;;  %v575_v38 = vpop.f32.mrb[10].mxu0  ;;  %v719_v39 = vpop.f32.mrb[12].mxu1 }
 0x182   : > { %v576_v40 = vpop.f32.mrb[11].mxu0  ;;  %v727_v41 = vadd.f32 %v719_v39, %v620_v30  ;;  %v1532_v42 = vpop.f32.mrb[13].mxu1  ;;  %v1278_v30 = vsub.s32 2, %v1269_v19 }
 0x183   : > { %v722_v43 = vpop.f32.mrb[14].mxu1  ;;  %v1270_v40 = vsub.s32 0, %v1269_v19  ;;  %v1290_v42 = vpop.permute.xlu0 %1289 }
 0x184   : > { %v1533_v44 = vpop.f32.mrb[15].mxu1  ;;  %v1279_v34 = vrot.slane %v1266_v29, %v1278_v30  ;;  %v1274_v43 = vsub.s32 1, %v1269_v19 }
 0x187   : > { %v678_v45 = vpop.f32.mrb[12].mxu0 }
 0x188   : > { %v725_v46 = vadd.f32 %v678_v45, %v618_v35  ;;  %v680_v47 = vpop.f32.mrb[13].mxu0 }
 0x189   : > { %v726_v48 = vadd.f32 %v680_v47, %v619_v37  ;;  %v682_v49 = vpop.f32.mrb[14].mxu0  ;;  %v826_v50 = vpop.f32.mrb[16].mxu1 }
 0x18a   : > { %v683_v51 = vpop.f32.mrb[15].mxu0  ;;  %v834_v52 = vadd.f32 %v826_v50, %v727_v41  ;;  %v1538_v53 = vpop.f32.mrb[17].mxu1  ;;  %v1275_v50 = vrot.slane %v1266_v29, %v1274_v43 }
 0x18b   : > { %v829_v54 = vpop.f32.mrb[18].mxu1 }
 0x18c   : > { %v1539_v55 = vpop.f32.mrb[19].mxu1 }
 0x18f   : > { %v785_v56 = vpop.f32.mrb[16].mxu0 }
 0x190   : > { %v832_v57 = vadd.f32 %v785_v56, %v725_v46  ;;  %v787_v58 = vpop.f32.mrb[17].mxu0 }
 0x191   : > { %v833_v59 = vadd.f32 %v787_v58, %v726_v48  ;;  %v789_v60 = vpop.f32.mrb[18].mxu0  ;;  %v933_v61 = vpop.f32.mrb[20].mxu1  ;;  %v1271_v48 = vrot.slane %v1266_v29, %v1270_v40 }
 0x192   : > { %v790_v62 = vpop.f32.mrb[19].mxu0  ;;  %v941_v63 = vadd.f32 %v933_v61, %v834_v52  ;;  %v1544_v2 = vpop.f32.mrb[21].mxu1 }
 0x193   : > { %v936_v3 = vpop.f32.mrb[22].mxu1 }
 0x194   : > { %v1545_v4 = vpop.f32.mrb[23].mxu1 }
 0x197   : > { %v892_v5 = vpop.f32.mrb[20].mxu0 }
 0x198   : > { %v939_v6 = vadd.f32 %v892_v5, %v832_v57  ;;  %v894_v7 = vpop.f32.mrb[21].mxu0 }
 0x199   : > { %v940_v8 = vadd.f32 %v894_v7, %v833_v59  ;;  %v896_v9 = vpop.f32.mrb[22].mxu0  ;;  %v1040_v10 = vpop.f32.mrb[24].mxu1 }
 0x19a   : > { %v897_v11 = vpop.f32.mrb[23].mxu0  ;;  %v1048_v12 = vadd.f32 %v1040_v10, %v941_v63  ;;  %v1550_v13 = vpop.f32.mrb[25].mxu1 }
 0x19b   : > { %v1043_v14 = vpop.f32.mrb[26].mxu1 }
 0x19c   : > { %v1551_v15 = vpop.f32.mrb[27].mxu1 }
 0x19f   : > { %v999_v17 = vpop.f32.mrb[24].mxu0 }
 0x1a0   : > { %v1046_v18 = vadd.f32 %v999_v17, %v939_v6  ;;  %v1001_v0 = vpop.f32.mrb[25].mxu0 }
 0x1a1   : > { %v1047_v20 = vadd.f32 %v1001_v0, %v940_v8  ;;  %v1003_v21 = vpop.f32.mrb[26].mxu0  ;;  %v1147_v22 = vpop.f32.mrb[28].mxu1 }
 0x1a2   : > { %v1004_v25 = vpop.f32.mrb[27].mxu0  ;;  %v1155_v1 = vadd.f32 %v1147_v22, %v1048_v12  ;;  %v1556_v26 = vpop.f32.mrb[29].mxu1 }
 0x1a3   : > { %v1150_v27 = vpop.f32.mrb[30].mxu1 }
 0x1a4   : > { %v1557_v28 = vpop.f32.mrb[31].mxu1 }
 0x1a7   : > { %v1106_v31 = vpop.f32.mrb[28].mxu0 }
 0x1a8   : > { %v1153_v32 = vadd.f32 %v1106_v31, %v1046_v18  ;;  %v1108_v33 = vpop.f32.mrb[29].mxu0 }
 0x1a9   : > { %v1154_v35 = vadd.f32 %v1108_v33, %v1047_v20  ;;  %v1110_v36 = vpop.f32.mrb[30].mxu0  ;;  %v1254_v37 = vpop.f32.mrb[32].mxu1 }
 0x1aa   : > { %v1111_v38 = vpop.f32.mrb[31].mxu0  ;;  %v1262_v39 = vadd.f32 %v1254_v37, %v1155_v1  ;;  %v1562_v41 = vpop.f32.mrb[33].mxu1 }
 0x1ab   : > { %v1257_v44 = vpop.f32.mrb[34].mxu1 }
 0x1ac   : > { %v1285_v45 = vadd.f32 %v1279_v34, %v1262_v39  ;;  %v1563_v46 = vpop.f32.mrb[35].mxu1 }
 0x1ae   : > { %v1294_v47 = vadd.f32 %v1290_v42, %v1285_v45 }
 0x1af   : > { %v1213_v49 = vpop.f32.mrb[32].mxu0 }
 0x1b0   : > { %vm1297_vm11 = vcmp.ge.f32.partialorder %v1294_v47, 0.0  ;;  %v1300_v51 = vmul.f32 0.2, %v1294_v47  ;;  %v1260_v52 = vadd.f32 %v1213_v49, %v1153_v32  ;;  %v1215_v53 = vpop.f32.mrb[33].mxu0 }
 0x1b1   : > { %v1261_v54 = vadd.f32 %v1215_v53, %v1154_v35  ;;  %v1217_v55 = vpop.f32.mrb[34].mxu0 }
 0x1b2   : > { %v1303_v56 = vsel %vm1297_vm11, %v1294_v47, %v1300_v51  ;;  %v1283_v57 = vadd.f32 %v1271_v48, %v1260_v52  ;;  %v1218_v58 = vpop.f32.mrb[35].mxu0 }
 0x1b3   : > { %v1306_v59 = vmul.f32 1.4142135, %v1303_v56  ;;  %v1284_v60 = vadd.f32 %v1275_v50, %v1261_v54 }
 0x1b4   : > { %v1292_v61 = vadd.f32 %v1290_v42, %v1283_v57 }
 0x1b5   : > { %v1293_v62 = vadd.f32 %v1290_v42, %v1284_v60  ;;  %1310 = vst.msk [vmem:[%s281_s18 + $0x10] sm:$0xff] %vm1309_vm12, %v1306_v59 }
 0x1b6   : > { %vm1295_vm13 = vcmp.ge.f32.partialorder %v1292_v61, 0.0  ;;  %v1298_v63 = vmul.f32 0.2, %v1292_v61 }
 0x1b7   : > { %vm1296_vm14 = vcmp.ge.f32.partialorder %v1293_v62, 0.0  ;;  %v1299_v2 = vmul.f32 0.2, %v1293_v62 }
 0x1b8   : > { %v1301_v3 = vsel %vm1295_vm13, %v1292_v61, %v1298_v63 }
 0x1b9   : > { %v1304_v4 = vmul.f32 1.4142135, %v1301_v3  ;;  %v1302_v5 = vsel %vm1296_vm14, %v1293_v62, %v1299_v2 }
 0x1ba   : > { %v1305_v6 = vmul.f32 1.4142135, %v1302_v5 }
 0x1bb   : > { %1307 = vst [vmem:[%s281_s18] sm:$0xff] %v1304_v4 }
 0x1bc   : > { %1308 = vst [vmem:[%s281_s18 + $0x8] sm:$0xff] %v1305_v6 }
 0x1bd   : > { %1652 = shalt.err (!%p1649_p5)
}
 0x1be   : > { %s1653_s13 = scalar_lea.hbm %s1940_s30, 384  ;;  %s1657_s16 = scalar_lea.hbm %s1994_s5, 768 }
 0x1bf   : > { %p1654_p6 = scmp.ne.s32.totalorder %s1940_s30, %s1653_s13  ;;  %p1658_p10 = scmp.lt.u32.totalorder %s1940_s30, %s1994_s5 }
 0x1c0   : > { %p1659_p11 = scmp.lt.u32.totalorder %s1657_s16, %s1653_s13  ;;  %p1661_p13 = scmp.lt.u32.totalorder %s1653_s13, %s1940_s30 }
 0x1c1   : > { %p1655_p7 = pnand %p1654_p6, %p1804_p4 }
 0x1c2   : > { %p1660_p12 = por %p1659_p11, %p1658_p10 }
 0x1c3   : > { %p1656_p9 = pneg %p1655_p7 }
 0x1c4   : > { %p1662_p0 = por %p1661_p13, %p1660_p12 }
 0x1c6   : > { %p1663_p1 = pnand %p1662_p0, %p1656_p9 }
 0x1c8   : > { %1666 = shalt.err (!%p1663_p1)
}
 0x1c9   : > { %1569 = dma.vmem_to_hbm [thread:$0]  (%p1804_p4), %s1942_s0, 384, %s1940_s30, %s1312_s23  }
 0x1ca PF: > { %p1575_p2 = scmp.ge.s32.totalorder %s1717_s25, 2  ;;  %s1340_s18 = sand.u32 1, %s1697_s20  }
 0x1cb   : > { %s1341_s19 = scalar_lea.sflag [#allocation4], %s1340_s18 }
 0x1cc   : > { %p1572_p3 = pnand %p1575_p2, %p1811_p8 }
 0x1ce   : > { %1692 = dma.done.wait (!%p1572_p3), %s1341_s19, 384  }
 0x1cf   : > { %1694 = vsyncadd (!%p1572_p3), %s1341_s19, 4294966912  ;;  %s19_s25 = sadd.s32 1, %s1717_s25   ;;  %s1997_s20 = smov %s1701_s21 }
 0x1d0   : > { %p16_p5 = scmp.ge.s32.totalorder %s19_s25, 4   ;;  %s1998_s21 = smov %s1705_s22 }
 0x1d1   : > { %s1999_s22 = smov %s1817_s7  ;;  %s2000_s23 = smov %s1713_s24 }
 0x1d2   : > { %s2001_s24 = smov %s2003_s27  ;;  %18 = sbr.rel (!%p16_p5) target bundleno = 6 (0x6), region = 92 }
 0x1d9   :  { %1346 = vsyncpa [#allocation4], 1 }
 0x1da   :  { %1348 = vsyncpa [#allocation4 + $0x1], 1 }

</bundles_post_ra>
